<compile_context>
chip_gen: v7x
topology: tpu7x:2x2x1
jax: 0.10.0
libtpu: 0.0.40
codegen_flags: <defaults>
</compile_context>

<pallas_src>
import functools

import jax
import jax.numpy as jnp
from jax.experimental import pallas as pl
from jax.experimental.pallas import tpu as pltpu


# ----------------------------- Pallas kernel --------------------------------

def fused_conv_pool_head_kernel(x_ref, wt_ref, cb_ref, hw_ref, hb_ref, o_ref,
                                *, bblk, H, inv_hw):
    # x_ref : [1, bblk*H, Kpad]   dy-concatenated padded image rows, bf16
    # wt_ref: [Kpad, WHpad]       fused block-Toeplitz conv weights, bf16
    # cb_ref: [1, WHpad]          conv bias tiled over W, f32
    # hw_ref: [WHpad, Cpad]       head weights (tiled over W, classes padded), bf16
    # hb_ref: [1, Cpad]           head bias (classes padded), f32
    # o_ref : [1, bblk, Cpad]     logits for this batch block, f32
    x = x_ref[0]                                              # [bblk*H, Kpad]

    # Single fused MXU matmul over K = kh*(W+2)*C (padded): the 3x3 "same" conv,
    # output laid out lane-dense as [bblk*H, W*hidden].
    acc = jnp.dot(x, wt_ref[...], preferred_element_type=jnp.float32)

    # Bias + ReLU in f32 on the VPU (v5e has no bf16 VALU).
    feat = jnp.maximum(acc + cb_ref[...], 0.0)                # [bblk*H, WHpad]

    # Head matmul (fold over W happens inside the contraction); Cpad=128 lanes.
    part = jnp.dot(feat.astype(jnp.bfloat16), hw_ref[...],
                   preferred_element_type=jnp.float32)        # [bblk*H, Cpad]

    # Global average pool = per-image sum over H, scaled by 1/(H*W) in f32.
    pooled = jnp.sum(part.reshape(bblk, H, part.shape[-1]), axis=1)  # [bblk, Cpad]
    o_ref[0] = pooled * inv_hw + hb_ref[...]


# ------------------------------ JAX glue code --------------------------------

def build_toeplitz_conv_w(conv_w, W):
    """conv_w [kh, kw, C, hidden] -> fused block-Toeplitz [kh*(W+kw-1)*C, W*hidden].

    Row index (dy, px, c), column index (qx, o):
      wt[dy*(W+kw-1)*C + px*C + c, qx*hidden + o] = conv_w[dy, px-qx, c, o]  if 0<=px-qx<kw
    so that (dy-concatenated padded row slices) @ wt  ==  'same' 3x3 conv with
    the output laid out lane-dense as [H, W*hidden].
    """
    kh, kw, C, hidden = conv_w.shape
    Wp = W + kw - 1
    p = jnp.arange(Wp * C)
    q = jnp.arange(W * hidden)
    px, pc = p // C, p % C
    qx, qo = q // hidden, q % hidden
    dx = px[:, None] - qx[None, :]                     # [Wp*C, W*hidden]
    valid = (dx >= 0) & (dx < kw)
    dxc = jnp.clip(dx, 0, kw - 1)
    wt = conv_w[:, dxc, pc[:, None], qo[None, :]]      # [kh, Wp*C, W*hidden]
    wt = jnp.where(valid[None], wt, 0.0)
    return wt.reshape(kh * Wp * C, W * hidden)         # fused over dy along K


def _round_up(x, m):
    return (x + m - 1) // m * m


def _pick_batch_block(n, h, m_target=256):
    """Largest divisor of n with B_blk*h <= m_target, preferring >=2 grid steps
    (so both v7x TensorCores get work)."""
    divisors = [d for d in range(1, n + 1) if n % d == 0]
    cands = [d for d in divisors if d * h <= m_target] or [1]
    pref = [d for d in cands if n // d >= 2]
    return max(pref) if pref else max(cands)


def init_params(key, c_in, hidden, classes):
    k1, k2, k3, k4 = jax.random.split(key, 4)
    conv_w = jax.random.normal(k1, (3, 3, c_in, hidden), jnp.float32) * 0.1
    conv_b = jax.random.normal(k2, (1, hidden), jnp.float32) * 0.1
    fc_w = jax.random.normal(k3, (hidden, classes), jnp.float32) * 0.1
    fc_b = jax.random.normal(k4, (1, classes), jnp.float32) * 0.1
    return conv_w, conv_b, fc_w, fc_b


@functools.partial(jax.jit, static_argnames=("classes",))
def model_wrapper_forward(x_nchw, conv_w, conv_b, fc_w, fc_b, *, classes):
    """Equivalent of ModelWrapper.forward(x) for the synthetic inner model."""
    n, c, h, w = x_nchw.shape
    kh, kw, _, hidden = conv_w.shape

    kp = (w + kw - 1) * c          # per-dy contraction length
    kcat = kh * kp                 # fused contraction length (216 here)
    kpad = _round_up(kcat, 128)    # 216 -> 256: fills the 256-deep MXU K
    whid = w * hidden              # lane-dense feature width (512 here)
    whpad = _round_up(whid, 128)
    cpad = _round_up(classes, 128)  # lane-dense head output, no masked stores

    bblk = _pick_batch_block(n, h)  # images per grid step
    nblk = n // bblk

    # NCHW -> padded NHWC rows flattened as (w, c); dy-shifted row slices are
    # concatenated along K in the wrapper so the kernel does ONE conv matmul.
    x_nhwc = jnp.transpose(x_nchw, (0, 2, 3, 1))
    xp = jnp.pad(x_nhwc, ((0, 0), (1, 1), (1, 1), (0, 0)))
    xp2 = xp.reshape(n, h + kh - 1, kp)
    x_cat = jnp.concatenate([xp2[:, dy:dy + h, :] for dy in range(kh)], axis=-1)
    x_cat = jnp.pad(x_cat, ((0, 0), (0, 0), (0, kpad - kcat)))
    x_blk = x_cat.reshape(nblk, bblk * h, kpad).astype(jnp.bfloat16)

    # Weight preprocessing (tiny, weight-only).
    wt = build_toeplitz_conv_w(conv_w, w)                                # [kcat, whid]
    wt = jnp.pad(wt, ((0, kpad - kcat), (0, whpad - whid))).astype(jnp.bfloat16)
    cb = jnp.pad(jnp.tile(conv_b, (1, w)),
                 ((0, 0), (0, whpad - whid))).astype(jnp.float32)        # [1, whpad]
    hw = jnp.pad(jnp.tile(fc_w, (w, 1)),
                 ((0, whpad - whid), (0, cpad - classes))).astype(jnp.bfloat16)
    hb = jnp.pad(fc_b, ((0, 0), (0, cpad - classes))).astype(jnp.float32)

    flops = n * h * 2 * (kpad * whpad + whpad * cpad)
    bytes_accessed = (n * h * kpad * 2 + kpad * whpad * 2 + whpad * 4
                      + whpad * cpad * 2 + cpad * 4 + n * cpad * 4)

    out = pl.pallas_call(
        functools.partial(fused_conv_pool_head_kernel,
                          bblk=bblk, H=h, inv_hw=1.0 / float(h * w)),
        out_shape=jax.ShapeDtypeStruct((nblk, bblk, cpad), jnp.float32),
        grid=(nblk,),
        in_specs=[
            pl.BlockSpec((1, bblk * h, kpad), lambda i: (i, 0, 0)),  # per-block images
            pl.BlockSpec((kpad, whpad), lambda i: (0, 0)),           # resident weights
            pl.BlockSpec((1, whpad), lambda i: (0, 0)),
            pl.BlockSpec((whpad, cpad), lambda i: (0, 0)),
            pl.BlockSpec((1, cpad), lambda i: (0, 0)),
        ],
        out_specs=pl.BlockSpec((1, bblk, cpad), lambda i: (i, 0, 0)),
        compiler_params=pltpu.CompilerParams(
            dimension_semantics=("parallel",)),
        cost_estimate=pl.CostEstimate(
            flops=flops, transcendentals=0, bytes_accessed=bytes_accessed),
    )(x_blk, wt, cb, hw, hb)

    # TODO(synk): for large H*W, add a second ("arbitrary") grid axis tiling the
    # spatial dim with a VMEM accumulator; size the tile so the block-Toeplitz
    # weight (3*(W_t+2)*C*W_t*hidden*2 bytes, x2 buffered) stays under v7x's
    # 32 MiB scoped / 64 MiB physical VMEM.
    return out.reshape(n, cpad)[:, :classes]


def reference_forward(x_nchw, conv_w, conv_b, fc_w, fc_b):
    """Pure-JAX f32 reference for correctness checking."""
    n, c, h, w = x_nchw.shape
    hidden = conv_w.shape[-1]
    x_nhwc = jnp.transpose(x_nchw, (0, 2, 3, 1))
    xp = jnp.pad(x_nhwc, ((0, 0), (1, 1), (1, 1), (0, 0)))
    cols = []
    for dy in range(3):
        for dx in range(3):
            cols.append(xp[:, dy:dy + h, dx:dx + w, :])
    patches = jnp.concatenate(cols, axis=-1).reshape(n * h * w, 9 * c)
    feat = jnp.maximum(patches @ conv_w.transpose(0, 1, 2, 3).reshape(9 * c, hidden)
                       + conv_b, 0.0)
    pooled = feat.reshape(n, h * w, hidden).mean(axis=1)
    return pooled @ fc_w + fc_b


# ---------------------------------- main -------------------------------------

if __name__ == "__main__":
    # ModelWrapper(model, classes, size, threshold)
    classes = 10
    size = 16           # attribute only; unused in forward math
    threshold = 0.5     # attribute only; unused in forward math

    N, C, H, W = 2, 4, 16, 16
    hidden = 32

    key = jax.random.PRNGKey(0)
    kx, kparam = jax.random.split(key)
    x = jax.random.normal(kx, (N, C, H, W), jnp.float32)
    conv_w, conv_b, fc_w, fc_b = init_params(kparam, C, hidden, classes)

    out = model_wrapper_forward(x, conv_w, conv_b, fc_w, fc_b, classes=classes)
    out = jax.block_until_ready(out)

    ref = reference_forward(x, conv_w, conv_b, fc_w, fc_b)
    assert out.shape == (N, classes)
    # bf16 MXU operands with f32 accumulation: loose-but-safe tolerance vs f32 ref.
    assert jnp.allclose(out, ref, atol=2e-2, rtol=2e-2), (
        float(jnp.max(jnp.abs(out - ref))))

    print("KERNEL_OK")
</pallas_src>

<mosaic_0001>
module attributes {stable_mosaic.version = 11 : i64} {
  func.func @fused_conv_pool_head_kernel(%arg0: i32, %arg1: memref<1x16x256xbf16, #tpu.memory_space<vmem>>, %arg2: memref<256x512xbf16, #tpu.memory_space<vmem>>, %arg3: memref<1x512xf32, #tpu.memory_space<vmem>>, %arg4: memref<512x128xbf16, #tpu.memory_space<vmem>>, %arg5: memref<1x128xf32, #tpu.memory_space<vmem>>, %arg6: memref<1x1x128xf32, #tpu.memory_space<vmem>>) attributes {dimension_semantics = [#tpu.dimension_semantics<parallel>], iteration_bounds = array<i64: 2>, scalar_prefetch = 0 : i64, scratch_operands = 0 : i64, tpu.core_type = #tpu.core_type<tc>, window_params = [{transform_indices = @transform_0, window_bounds = array<i64: 1, 16, 256>}, {pipeline_mode = #tpu.pipeline_mode<synchronous>, transform_indices = @transform_1, window_bounds = array<i64: 256, 512>}, {pipeline_mode = #tpu.pipeline_mode<synchronous>, transform_indices = @transform_2, window_bounds = array<i64: 1, 512>}, {pipeline_mode = #tpu.pipeline_mode<synchronous>, transform_indices = @transform_3, window_bounds = array<i64: 512, 128>}, {pipeline_mode = #tpu.pipeline_mode<synchronous>, transform_indices = @transform_4, window_bounds = array<i64: 1, 128>}, {transform_indices = @transform_5, window_bounds = array<i64: 1, 1, 128>}]} {
    %c0 = arith.constant 0 : index
    %c0_0 = arith.constant 0 : index
    %c0_1 = arith.constant 0 : index
    %0 = vector.load %arg1[%c0, %c0_0, %c0_1] : memref<1x16x256xbf16, #tpu.memory_space<vmem>>, vector<1x16x256xbf16>
    %1 = vector.shape_cast %0 : vector<1x16x256xbf16> to vector<16x256xbf16>
    %c0_2 = arith.constant 0 : index
    %c0_3 = arith.constant 0 : index
    %2 = vector.load %arg2[%c0_2, %c0_3] : memref<256x512xbf16, #tpu.memory_space<vmem>>, vector<256x512xbf16>
    %cst = arith.constant dense<0.000000e+00> : vector<16x512xf32>
    %3 = tpu.matmul %1, %2, %cst {dimension_numbers = #tpu.dot_dimension_numbers<[1], [0], [0], [1], [0, 0, 1, 1], [], []>} : vector<16x256xbf16>, vector<256x512xbf16>, vector<16x512xf32> -> vector<16x512xf32>
    %c0_4 = arith.constant 0 : index
    %c0_5 = arith.constant 0 : index
    %4 = vector.load %arg3[%c0_4, %c0_5] : memref<1x512xf32, #tpu.memory_space<vmem>>, vector<1x512xf32>
    %5 = vector.broadcast %4 : vector<1x512xf32> to vector<16x512xf32>
    %6 = arith.addf %3, %5 : vector<16x512xf32>
    %cst_6 = arith.constant 0.000000e+00 : f32
    %7 = vector.broadcast %cst_6 : f32 to vector<16x512xf32>
    %8 = arith.maximumf %6, %7 : vector<16x512xf32>
    %9 = arith.truncf %8 : vector<16x512xf32> to vector<16x512xbf16>
    %c0_7 = arith.constant 0 : index
    %c0_8 = arith.constant 0 : index
    %10 = vector.load %arg4[%c0_7, %c0_8] : memref<512x128xbf16, #tpu.memory_space<vmem>>, vector<512x128xbf16>
    %cst_9 = arith.constant dense<0.000000e+00> : vector<16x128xf32>
    %11 = tpu.matmul %9, %10, %cst_9 {dimension_numbers = #tpu.dot_dimension_numbers<[1], [0], [0], [1], [0, 0, 1, 1], [], []>} : vector<16x512xbf16>, vector<512x128xbf16>, vector<16x128xf32> -> vector<16x128xf32>
    %12 = vector.shape_cast %11 : vector<16x128xf32> to vector<1x16x128xf32>
    %cst_10 = arith.constant dense<0.000000e+00> : vector<1x128xf32>
    %13 = vector.multi_reduction <add>, %12, %cst_10 [1] : vector<1x16x128xf32> to vector<1x128xf32>
    %cst_11 = arith.constant 3.906250e-03 : f32
    %14 = vector.broadcast %cst_11 : f32 to vector<1x128xf32>
    %15 = arith.mulf %13, %14 : vector<1x128xf32>
    %c0_12 = arith.constant 0 : index
    %c0_13 = arith.constant 0 : index
    %16 = vector.load %arg5[%c0_12, %c0_13] : memref<1x128xf32, #tpu.memory_space<vmem>>, vector<1x128xf32>
    %17 = arith.addf %15, %16 : vector<1x128xf32>
    %c0_14 = arith.constant 0 : index
    %c0_15 = arith.constant 0 : index
    %c0_16 = arith.constant 0 : index
    %18 = vector.load %arg6[%c0_14, %c0_15, %c0_16] : memref<1x1x128xf32, #tpu.memory_space<vmem>>, vector<1x1x128xf32>
    %19 = vector.shape_cast %18 : vector<1x1x128xf32> to vector<1x128xf32>
    %20 = vector.shape_cast %17 : vector<1x128xf32> to vector<1x1x128xf32>
    tpu.vector_store %arg6[%c0_14, %c0_15, %c0_16], %20 {strides = array<i32>} : memref<1x1x128xf32, #tpu.memory_space<vmem>>, vector<1x1x128xf32>,
    return
  }
  func.func @transform_0(%arg0: i32) -> (i32, i32, i32) {
    %c0_i32 = arith.constant 0 : i32
    %c0_i32_0 = arith.constant 0 : i32
    %c0_i32_1 = arith.constant 0 : i32
    return %arg0, %c0_i32, %c0_i32_0 : i32, i32, i32
  }
  func.func @transform_1(%arg0: i32) -> (i32, i32) {
    %c0_i32 = arith.constant 0 : i32
    %c0_i32_0 = arith.constant 0 : i32
    %c0_i32_1 = arith.constant 0 : i32
    return %c0_i32, %c0_i32_0 : i32, i32
  }
  func.func @transform_2(%arg0: i32) -> (i32, i32) {
    %c0_i32 = arith.constant 0 : i32
    %c0_i32_0 = arith.constant 0 : i32
    %c0_i32_1 = arith.constant 0 : i32
    return %c0_i32, %c0_i32_0 : i32, i32
  }
  func.func @transform_3(%arg0: i32) -> (i32, i32) {
    %c0_i32 = arith.constant 0 : i32
    %c0_i32_0 = arith.constant 0 : i32
    %c0_i32_1 = arith.constant 0 : i32
    return %c0_i32, %c0_i32_0 : i32, i32
  }
  func.func @transform_4(%arg0: i32) -> (i32, i32) {
    %c0_i32 = arith.constant 0 : i32
    %c0_i32_0 = arith.constant 0 : i32
    %c0_i32_1 = arith.constant 0 : i32
    return %c0_i32, %c0_i32_0 : i32, i32
  }
  func.func @transform_5(%arg0: i32) -> (i32, i32, i32) {
    %c0_i32 = arith.constant 0 : i32
    %c0_i32_0 = arith.constant 0 : i32
    %c0_i32_1 = arith.constant 0 : i32
    return %arg0, %c0_i32, %c0_i32_0 : i32, i32, i32
  }
}

</mosaic_0001>

<bundles_post_ra>
// kernel: model_wrapper_forward.1
= control target key start
LH: loop header
LB: loop body
LE: loop exit
PB: predicated region body
PF: predicated region fallthrough
CT: control target
= control target key end

     0   :  { %10 = vsyncpa [#allocation3], 0  ;;  %s1971_s0 = inlined_call_operand.vmem [shape: bf16[2,16,256], index: 0, kind: input, shape index: {}]   ;;  %s1972_s1 = inlined_call_operand.vmem [shape: bf16[256,512], index: 1, kind: input, shape index: {}]   ;;  %s1973_s2 = inlined_call_operand.vmem [shape: f32[1,512], index: 2, kind: input, shape index: {}]   ;;  %s1974_s3 = inlined_call_operand.vmem [shape: bf16[512,128], index: 3, kind: input, shape index: {}]   ;;  %s1975_s4 = inlined_call_operand.vmem [shape: f32[1,128], index: 4, kind: input, shape index: {}]   ;;  %s1976_s5 = inlined_call_operand.hbm [shape: f32[2,1,128], index: 5, kind: output, shape index: {}]  }
   0x1   :  { %12 = vsyncpa [#allocation3 + $0x1], 0  ;;  %s1573_s18 = smov 0   ;;  %s1575_s19 = smov 0  }
   0x2   :  { %s1577_s20 = smov 0   ;;  %s1579_s21 = smov 0  }
   0x3 LB: > { %s1594_s22 = sadd.s32 4294967295, %s1540_s21   ;;  %s1156_s23 = sadd.s32 4294967294, %s1540_s21   ;;  %s1540_s21 = sphi %s1579_s21, %s1982_s21   ;;  %s1536_s20 = sphi %s1577_s20, %s1981_s20   ;;  %s1532_s19 = sphi %s1575_s19, %s1980_s19   ;;  %s1528_s18 = sphi %s1573_s18, %s1979_s18  }
   0x4   : > { %s1598_s24 = sadd.s32 1, %s1540_s21   ;;  %s135_s25 = sadd.s32 1, %s1536_s20 }
   0x5   : > { %s132_s26 = ssub.s32 %s1540_s21, %s1598_s24  ;;  %p145_p0 = scmp.ne.s32.totalorder %s1536_s20, %s1532_s19 }
   0x6   : > { %p133_p1 = scmp.eq.s32.totalorder %s132_s26, 0  ;;  %p146_p2 = scmp.eq.s32.totalorder %s1594_s22, 1 }
   0x7   : > { %p151_p3 = scmp.ne.s32.totalorder %s1532_s19, %s1528_s18  ;;  %p152_p4 = scmp.eq.s32.totalorder %s1156_s23, 1 }
   0x8   : > { %s1609_s27 = scalar_select %p133_p1, %s1536_s20, %s135_s25  }
   0x9   : > { %p1611_p5 = por %p146_p2, %p145_p0  ;;  %p1615_p6 = por %p152_p4, %p151_p3 }
   0xa   : > { %p1159_p7 = scmp.ge.s32.totalorder %s1540_s21, 1  ;;  %p190_p8 = scmp.lt.s32.totalorder %s1540_s21, 3 }
   0xc   : > { %p191_p9 = pnand %p1159_p7, %p190_p8 }
   0xd   : > { %v1347_v0 = vld [vmem:[%s1972_s1 + $0x4] ss:$16 sps:$4 sm:$0xff] (!%p191_p9)   ;;  %v1349_v1 = vld [vmem:[%s1972_s1 + $0xc] ss:$16 sps:$4 sm:$0xff] (!%p191_p9)   ;;  %v1351_v2 = vld [vmem:[%s1972_s1] ss:$16 sps:$4 sm:$0xff] (!%p191_p9)  }
   0xe   : > { %194 = sbr.rel (%p191_p9) target bundleno = 551 (0x227), region = 40  ;;  %641 = vmatprep.subr.bf16.mxu0 (!%p191_p9), %v1347_v0  ;;  %v1352_v3 = vld [vmem:[%s1972_s1 + $0x8] ss:$16 sps:$4 sm:$0xff] (!%p191_p9)   ;;  %684 = vmatprep.subr.bf16.mxu1 (!%p191_p9), %v1349_v1  ;;  %v1353_v4 = vld [vmem:[%s1972_s1 + $0x24] ss:$16 sps:$4 sm:$0xff] (!%p191_p9)   ;;  %p217_p10 = scmp.lt.s32.totalorder (!%p191_p9), %s1594_s22, 1 }
   0xf   : > { %642 = vmatpush1.bf16.msra.mxu0 (!%p191_p9), %v1351_v2  ;;  %685 = vmatpush1.bf16.msra.mxu1 (!%p191_p9), %v1352_v3  ;;  %v1355_v5 = vld [vmem:[%s1972_s1 + $0x2c] ss:$16 sps:$4 sm:$0xff] (!%p191_p9)   ;;  %v1357_v6 = vld [vmem:[%s1972_s1 + $0x20] ss:$16 sps:$4 sm:$0xff] (!%p191_p9)   ;;  %v1358_v7 = vld [vmem:[%s1972_s1 + $0x28] ss:$16 sps:$4 sm:$0xff] (!%p191_p9)  }
  0x10   : > { %643 = vmatprep.subr.bf16.mxu0 (!%p191_p9), %v1353_v4  ;;  %686 = vmatprep.subr.bf16.mxu1 (!%p191_p9), %v1355_v5  ;;  %v1359_v8 = vld [vmem:[%s1972_s1 + $0x44] ss:$16 sps:$4 sm:$0xff] (!%p191_p9)   ;;  %v1361_v9 = vld [vmem:[%s1972_s1 + $0x4c] ss:$16 sps:$4 sm:$0xff] (!%p191_p9)   ;;  %v1363_v10 = vld [vmem:[%s1972_s1 + $0x40] ss:$16 sps:$4 sm:$0xff] (!%p191_p9)  }
  0x11   : > { %v1364_v11 = vld [vmem:[%s1972_s1 + $0x48] ss:$16 sps:$4 sm:$0xff] (!%p191_p9)   ;;  %v1365_v12 = vld [vmem:[%s1972_s1 + $0x64] ss:$16 sps:$4 sm:$0xff] (!%p191_p9)   ;;  %v1367_v13 = vld [vmem:[%s1972_s1 + $0x6c] ss:$16 sps:$4 sm:$0xff] (!%p191_p9)  }
  0x12   : > { %v1369_v14 = vld [vmem:[%s1972_s1 + $0x60] ss:$16 sps:$4 sm:$0xff] (!%p191_p9)   ;;  %v1370_v15 = vld [vmem:[%s1972_s1 + $0x68] ss:$16 sps:$4 sm:$0xff] (!%p191_p9)   ;;  %v1371_v16 = vld [vmem:[%s1972_s1 + $0x84] ss:$16 sps:$4 sm:$0xff] (!%p191_p9)  }
  0x13   : > { %644 = vmatpush1.bf16.msra.mxu0 (!%p191_p9), %v1357_v6  ;;  %687 = vmatpush1.bf16.msra.mxu1 (!%p191_p9), %v1358_v7  ;;  %v1373_v17 = vld [vmem:[%s1972_s1 + $0x8c] ss:$16 sps:$4 sm:$0xff] (!%p191_p9)   ;;  %v1375_v18 = vld [vmem:[%s1972_s1 + $0x80] ss:$16 sps:$4 sm:$0xff] (!%p191_p9)   ;;  %v1376_v19 = vld [vmem:[%s1972_s1 + $0x88] ss:$16 sps:$4 sm:$0xff] (!%p191_p9)  }
  0x14   : > { %645 = vmatprep.subr.bf16.mxu0 (!%p191_p9), %v1359_v8  ;;  %688 = vmatprep.subr.bf16.mxu1 (!%p191_p9), %v1361_v9  ;;  %v1377_v20 = vld [vmem:[%s1972_s1 + $0xa4] ss:$16 sps:$4 sm:$0xff] (!%p191_p9)   ;;  %v1379_v21 = vld [vmem:[%s1972_s1 + $0xac] ss:$16 sps:$4 sm:$0xff] (!%p191_p9)   ;;  %v1381_v22 = vld [vmem:[%s1972_s1 + $0xa0] ss:$16 sps:$4 sm:$0xff] (!%p191_p9)  }
  0x15   : > { %v1382_v23 = vld [vmem:[%s1972_s1 + $0xa8] ss:$16 sps:$4 sm:$0xff]   ;;  %v1383_v24 = vld [vmem:[%s1972_s1 + $0xc4] ss:$16 sps:$4 sm:$0xff]   ;;  %v1385_v25 = vld [vmem:[%s1972_s1 + $0xcc] ss:$16 sps:$4 sm:$0xff]  }
  0x16   : > { %v1387_v26 = vld [vmem:[%s1972_s1 + $0xc0] ss:$16 sps:$4 sm:$0xff]   ;;  %v1388_v27 = vld [vmem:[%s1972_s1 + $0xc8] ss:$16 sps:$4 sm:$0xff]   ;;  %v1389_v28 = vld [vmem:[%s1972_s1 + $0xe4] ss:$16 sps:$4 sm:$0xff]  }
  0x17   : > { %646 = vmatpush1.bf16.msra.mxu0 %v1363_v10  ;;  %689 = vmatpush1.bf16.msra.mxu1 %v1364_v11  ;;  %v1391_v29 = vld [vmem:[%s1972_s1 + $0xec] ss:$16 sps:$4 sm:$0xff]   ;;  %v1393_v30 = vld [vmem:[%s1972_s1 + $0xe0] ss:$16 sps:$4 sm:$0xff]   ;;  %v1394_v31 = vld [vmem:[%s1972_s1 + $0xe8] ss:$16 sps:$4 sm:$0xff]  }
  0x18   : > { %647 = vmatprep.subr.bf16.mxu0 %v1365_v12  ;;  %690 = vmatprep.subr.bf16.mxu1 %v1367_v13  ;;  %v1395_v32 = vld [vmem:[%s1972_s1 + $0x104] ss:$16 sps:$4 sm:$0xff]   ;;  %v1397_v33 = vld [vmem:[%s1972_s1 + $0x10c] ss:$16 sps:$4 sm:$0xff]   ;;  %v1399_v34 = vld [vmem:[%s1972_s1 + $0x100] ss:$16 sps:$4 sm:$0xff]  }
  0x19   : > { %v1400_v35 = vld [vmem:[%s1972_s1 + $0x108] ss:$16 sps:$4 sm:$0xff]   ;;  %v1401_v36 = vld [vmem:[%s1972_s1 + $0x124] ss:$16 sps:$4 sm:$0xff]   ;;  %v1403_v37 = vld [vmem:[%s1972_s1 + $0x12c] ss:$16 sps:$4 sm:$0xff]  }
  0x1a   : > { %s218_s17 = scalar_select %p217_p10, %s1594_s22, 1  ;;  %v1405_v38 = vld [vmem:[%s1972_s1 + $0x120] ss:$16 sps:$4 sm:$0xff]   ;;  %v1406_v39 = vld [vmem:[%s1972_s1 + $0x128] ss:$16 sps:$4 sm:$0xff]  }
  0x1b   : > { %648 = vmatpush1.bf16.msra.mxu0 %v1369_v14  ;;  %691 = vmatpush1.bf16.msra.mxu1 %v1370_v15  ;;  %v1407_v40 = vld [vmem:[%s1972_s1 + $0x144] ss:$16 sps:$4 sm:$0xff]   ;;  %v1409_v41 = vld [vmem:[%s1972_s1 + $0x14c] ss:$16 sps:$4 sm:$0xff]   ;;  %v1411_v42 = vld [vmem:[%s1972_s1 + $0x140] ss:$16 sps:$4 sm:$0xff]  }
  0x1c   : > { %649 = vmatprep.subr.bf16.mxu0 %v1371_v16  ;;  %692 = vmatprep.subr.bf16.mxu1 %v1373_v17  ;;  %s1263_s10 = sshll.u32 %s218_s17, 4  ;;  %v1412_v43 = vld [vmem:[%s1972_s1 + $0x148] ss:$16 sps:$4 sm:$0xff]   ;;  %v1413_v44 = vld [vmem:[%s1972_s1 + $0x164] ss:$16 sps:$4 sm:$0xff]   ;;  %s215_s14 = sand.u32 1, %s1532_s19  }
  0x1d   : > { %s1761_s26 = scalar_lea.vmem %s1971_s0, %s1263_s10  ;;  %v1415_v45 = vld [vmem:[%s1972_s1 + $0x16c] ss:$16 sps:$4 sm:$0xff]   ;;  %v1417_v46 = vld [vmem:[%s1972_s1 + $0x160] ss:$16 sps:$4 sm:$0xff]   ;;  %v1418_v47 = vld [vmem:[%s1972_s1 + $0x168] ss:$16 sps:$4 sm:$0xff]  }
  0x1e   : > { %v1445_v48 = vld [vmem:[%s1761_s26 + $0x4] ss:$8 sps:$4 sm:$0xff]   ;;  %v1423_v51 = vld [vmem:[%s1972_s1 + $0x180] ss:$16 sps:$4 sm:$0xff]   ;;  %v1424_v52 = vld [vmem:[%s1972_s1 + $0x188] ss:$16 sps:$4 sm:$0xff]  }
  0x1f   : > { %650 = vmatpush1.bf16.msra.mxu0 %v1375_v18  ;;  %693 = vmatpush1.bf16.msra.mxu1 %v1376_v19  ;;  %v1419_v49 = vld [vmem:[%s1972_s1 + $0x184] ss:$16 sps:$4 sm:$0xff]   ;;  %v1421_v50 = vld [vmem:[%s1972_s1 + $0x18c] ss:$16 sps:$4 sm:$0xff]   ;;  %v1429_v55 = vld [vmem:[%s1972_s1 + $0x1a0] ss:$16 sps:$4 sm:$0xff]  }
  0x20   : > { %651 = vmatprep.subr.bf16.mxu0 %v1377_v20  ;;  %694 = vmatprep.subr.bf16.mxu1 %v1379_v21  ;;  %v1425_v53 = vld [vmem:[%s1972_s1 + $0x1a4] ss:$16 sps:$4 sm:$0xff]   ;;  %v1427_v54 = vld [vmem:[%s1972_s1 + $0x1ac] ss:$16 sps:$4 sm:$0xff]   ;;  %v1430_v56 = vld [vmem:[%s1972_s1 + $0x1a8] ss:$16 sps:$4 sm:$0xff]  }
  0x21   : > { %673 = vmatprep.mubr.bf16.mxu0 %v1445_v48  ;;  %716 = vmatprep.mubr.bf16.mxu1 %v1445_v48  ;;  %v1431_v57 = vld [vmem:[%s1972_s1 + $0x1c4] ss:$16 sps:$4 sm:$0xff]   ;;  %v1433_v58 = vld [vmem:[%s1972_s1 + $0x1cc] ss:$16 sps:$4 sm:$0xff]   ;;  %v1435_v59 = vld [vmem:[%s1972_s1 + $0x1c0] ss:$16 sps:$4 sm:$0xff]  }
  0x22   : > { %v1436_v60 = vld [vmem:[%s1972_s1 + $0x1c8] ss:$16 sps:$4 sm:$0xff]   ;;  %v1437_v61 = vld [vmem:[%s1972_s1 + $0x1e4] ss:$16 sps:$4 sm:$0xff]   ;;  %v1439_v62 = vld [vmem:[%s1972_s1 + $0x1ec] ss:$16 sps:$4 sm:$0xff]  }
  0x23   : > { %652 = vmatpush1.bf16.msra.mxu0 %v1381_v22  ;;  %695 = vmatpush1.bf16.msra.mxu1 %v1382_v23  ;;  %v1441_v63 = vld [vmem:[%s1972_s1 + $0x1e0] ss:$16 sps:$4 sm:$0xff]   ;;  %v1442_v0 = vld [vmem:[%s1972_s1 + $0x1e8] ss:$16 sps:$4 sm:$0xff]   ;;  %s1260_s23 = sshll.u32 %s1594_s22, 4  ;;  %s216_s25 = scalar_lea.vmem [#allocation2], %s215_s14 }
  0x24   : > { %653 = vmatprep.subr.bf16.mxu0 %v1383_v24  ;;  %696 = vmatprep.subr.bf16.mxu1 %v1385_v25  ;;  %v1446_v1 = vld [vmem:[%s1974_s3 + $0x40] sm:$0xff]   ;;  %v1450_v6 = vld [vmem:[%s1974_s3 + $0x48] sm:$0xff]   ;;  %v1454_v10 = vld [vmem:[%s1974_s3 + $0x50] sm:$0xff]   ;;  %s1101_s17 = sshll.u32 %s216_s25, 4  ;;  %s1089_s7 = scalar_lea.sflag [#allocation3], %s215_s14  ;;  %s1931_s17 = int_to_ptr.vmem [resolvable:$true] %s1101_s17 }
  0x25   : > { %v1443_v2 = vld [vmem:[%s1761_s26] ss:$8 sps:$4 sm:$0xff]   ;;  %v1455_v11 = vld [vmem:[%s1974_s3 + $0xd0] sm:$0xff]   ;;  %v1458_v14 = vld [vmem:[%s1974_s3 + $0x58] sm:$0xff]   ;;  %s1929_s26 = scalar_lea.hbm %s1976_s5, %s1260_s23  ;;  %s1478_s8 = scalar_lea.vmem %s1931_s17, 16 }
  0x26   : > { %v1447_v3 = vld [vmem:[%s1974_s3 + $0xc0] sm:$0xff]   ;;  %v1451_v7 = vld [vmem:[%s1974_s3 + $0xc8] sm:$0xff]   ;;  %v1456_v12 = vld [vmem:[%s1974_s3 + $0x10] sm:$0xff]   ;;  %p1479_p11 = scmp.ne.s32.totalorder %s1931_s17, %s1478_s8  ;;  %s1542_s22 = smov [#allocation2]  }
  0x27   : > { %654 = vmatpush1.bf16.msra.mxu0 %v1387_v26  ;;  %697 = vmatpush1.bf16.msra.mxu1 %v1388_v27  ;;  %v1448_v4 = vld [vmem:[%s1974_s3] sm:$0xff]   ;;  %v1452_v8 = vld [vmem:[%s1974_s3 + $0x8] sm:$0xff]   ;;  %v1457_v13 = vld [vmem:[%s1974_s3 + $0x90] sm:$0xff]   ;;  %s1482_s9 = sshll.u32 %s1542_s22, 4  ;;  %s1483_s9 = int_to_ptr.vmem [resolvable:$false] %s1482_s9 }
  0x28   : > { %655 = vmatprep.subr.bf16.mxu0 %v1389_v28  ;;  %698 = vmatprep.subr.bf16.mxu1 %v1391_v29  ;;  %v1449_v5 = vld [vmem:[%s1974_s3 + $0x80] sm:$0xff]   ;;  %v1453_v9 = vld [vmem:[%s1974_s3 + $0x88] sm:$0xff]   ;;  %v1459_v15 = vld [vmem:[%s1974_s3 + $0xd8] sm:$0xff]   ;;  %p1480_p12 = pnand %p1479_p11, %p1611_p5  ;;  %s1484_s10 = scalar_lea.vmem %s1483_s9, 32 }
  0x29   : > { %v1460_v16 = vld [vmem:[%s1974_s3 + $0x18] sm:$0xff]   ;;  %v1462_v18 = vld [vmem:[%s1974_s3 + $0x60] sm:$0xff]   ;;  %v1466_v22 = vld [vmem:[%s1974_s3 + $0x68] sm:$0xff]   ;;  %p1485_p0 = scmp.lt.s32.totalorder %s1931_s17, %s1483_s9  ;;  %p1486_p1 = scmp.lt.s32.totalorder %s1484_s10, %s1478_s8 }
  0x2a   : > { %v1461_v17 = vld [vmem:[%s1974_s3 + $0x98] sm:$0xff]   ;;  %v1463_v19 = vld [vmem:[%s1974_s3 + $0xe0] sm:$0xff]   ;;  %v1467_v23 = vld [vmem:[%s1974_s3 + $0xe8] sm:$0xff]   ;;  %p1481_p13 = pneg %p1480_p12 }
  0x2b   : > { %656 = vmatpush1.bf16.msra.mxu0 %v1393_v30  ;;  %699 = vmatpush1.bf16.msra.mxu1 %v1394_v31  ;;  %v1464_v20 = vld [vmem:[%s1974_s3 + $0x20] sm:$0xff]   ;;  %v1468_v24 = vld [vmem:[%s1974_s3 + $0x28] sm:$0xff]   ;;  %v1470_v26 = vld [vmem:[%s1974_s3 + $0x70] sm:$0xff]   ;;  %p1487_p2 = por %p1486_p1, %p1485_p0 }
  0x2c   : > { %657 = vmatprep.subr.bf16.mxu0 %v1395_v32  ;;  %700 = vmatprep.subr.bf16.mxu1 %v1397_v33  ;;  %v1465_v21 = vld [vmem:[%s1974_s3 + $0xa0] sm:$0xff]   ;;  %v1469_v25 = vld [vmem:[%s1974_s3 + $0xa8] sm:$0xff]   ;;  %v1471_v27 = vld [vmem:[%s1974_s3 + $0xf0] sm:$0xff]  }
  0x2d   : > { %v1472_v28 = vld [vmem:[%s1974_s3 + $0x30] sm:$0xff]   ;;  %v1474_v30 = vld [vmem:[%s1974_s3 + $0x78] sm:$0xff]   ;;  %p1488_p3 = pnand %p1487_p2, %p1481_p13 }
  0x2e   : > { %v1473_v29 = vld [vmem:[%s1974_s3 + $0xb0] sm:$0xff]   ;;  %v1475_v31 = vld [vmem:[%s1974_s3 + $0xf8] sm:$0xff]  }
  0x2f   : > { %658 = vmatpush1.bf16.msra.mxu0 %v1399_v34  ;;  %701 = vmatpush1.bf16.msra.mxu1 %v1400_v35  ;;  %v1476_v32 = vld [vmem:[%s1974_s3 + $0x38] sm:$0xff]   ;;  %v291_v34 = vlaneseq }
  0x30   : > { %659 = vmatprep.subr.bf16.mxu0 %v1401_v36  ;;  %702 = vmatprep.subr.bf16.mxu1 %v1403_v37  ;;  %v1477_v33 = vld [vmem:[%s1974_s3 + $0xb8] sm:$0xff]  }
  0x31   : > { %v292_v35 = vshrl.u32 %v291_v34, 7 }
  0x33   : > { %660 = vmatpush1.bf16.msra.mxu0 %v1405_v38  ;;  %703 = vmatpush1.bf16.msra.mxu1 %v1406_v39  ;;  %v293_v36 = vsub.s32 0, %v292_v35  ;;  %v301_v37 = vsub.s32 2, %v292_v35  ;;  %v289_v38 = vld [vmem:[%s1973_s2] sm:$0xf]  ;;  %v297_v39 = vsub.s32 1, %v292_v35 }
  0x34   : > { %661 = vmatprep.subr.bf16.mxu0 %v1407_v40  ;;  %704 = vmatprep.subr.bf16.mxu1 %v1409_v41  ;;  %v305_v40 = vsub.s32 3, %v292_v35 }
  0x35   : > { %v294_v41 = vrot.slane %v289_v38, %v293_v36 }
  0x37   : > { %662 = vmatpush1.bf16.msra.mxu0 %v1411_v42  ;;  %705 = vmatpush1.bf16.msra.mxu1 %v1412_v43  ;;  %v302_v42 = vrot.slane %v289_v38, %v301_v37  ;;  %v298_v43 = vrot.slane %v289_v38, %v297_v39 }
  0x38   : > { %663 = vmatprep.subr.bf16.mxu0 %v1413_v44  ;;  %706 = vmatprep.subr.bf16.mxu1 %v1415_v45  ;;  %v306_v44 = vrot.slane %v289_v38, %v305_v40 }
  0x3b   : > { %664 = vmatpush1.bf16.msra.mxu0 %v1417_v46  ;;  %707 = vmatpush1.bf16.msra.mxu1 %v1418_v47 }
  0x3c   : > { %665 = vmatprep.subr.bf16.mxu0 %v1419_v49  ;;  %708 = vmatprep.subr.bf16.mxu1 %v1421_v50 }
  0x3f   : > { %666 = vmatpush1.bf16.msra.mxu0 %v1423_v51  ;;  %709 = vmatpush1.bf16.msra.mxu1 %v1424_v52 }
  0x40   : > { %667 = vmatprep.subr.bf16.mxu0 %v1425_v53  ;;  %710 = vmatprep.subr.bf16.mxu1 %v1427_v54 }
  0x43   : > { %668 = vmatpush1.bf16.msra.mxu0 %v1429_v55  ;;  %711 = vmatpush1.bf16.msra.mxu1 %v1430_v56 }
  0x44   : > { %669 = vmatprep.subr.bf16.mxu0 %v1431_v57  ;;  %712 = vmatprep.subr.bf16.mxu1 %v1433_v58 }
  0x47   : > { %670 = vmatpush1.bf16.msra.mxu0 %v1435_v59  ;;  %713 = vmatpush1.bf16.msra.mxu1 %v1436_v60 }
  0x48   : > { %671 = vmatprep.subr.bf16.mxu0 %v1437_v61  ;;  %714 = vmatprep.subr.bf16.mxu1 %v1439_v62 }
  0x4b   : > { %672 = vmatpush1.bf16.msra.mxu0 %v1441_v63  ;;  %715 = vmatpush1.bf16.msra.mxu1 %v1442_v0 }
  0x4c   : > { %1264 = vmatprep.subr.bf16.mxu0 %v1446_v1  ;;  %1286 = vmatprep.subr.bf16.mxu1 %v1447_v3 }
  0x4e   : > { %674 = vmatmul.mubr.bf16.vlgmr.msra.gmra.mrb[0].mxu0 %v1443_v2  ;;  %717 = vmatmul.mubr.bf16.vlgmr.msra.gmra.mrb[0].mxu1 %v1443_v2 }
  0x4f   : > { %1265 = vmatpush3.bf16.msra.mxu0 %v1448_v4  ;;  %1287 = vmatpush3.bf16.msra.mxu1 %v1449_v5 }
  0x50   : > { %1266 = vmatprep.subr.bf16.mxu0 %v1450_v6  ;;  %1288 = vmatprep.subr.bf16.mxu1 %v1451_v7 }
  0x53   : > { %1267 = vmatpush3.bf16.msra.mxu0 %v1452_v8  ;;  %1289 = vmatpush3.bf16.msra.mxu1 %v1453_v9 }
  0x54   : > { %1268 = vmatprep.subr.bf16.mxu0 %v1454_v10  ;;  %1290 = vmatprep.subr.bf16.mxu1 %v1455_v11 }
  0x57   : > { %1269 = vmatpush3.bf16.msra.mxu0 %v1456_v12  ;;  %1291 = vmatpush3.bf16.msra.mxu1 %v1457_v13 }
  0x58   : > { %1270 = vmatprep.subr.bf16.mxu0 %v1458_v14  ;;  %1292 = vmatprep.subr.bf16.mxu1 %v1459_v15 }
  0x5b   : > { %1271 = vmatpush3.bf16.msra.mxu0 %v1460_v16  ;;  %1293 = vmatpush3.bf16.msra.mxu1 %v1461_v17 }
  0x5c   : > { %1272 = vmatprep.subr.bf16.mxu0 %v1462_v18  ;;  %1294 = vmatprep.subr.bf16.mxu1 %v1463_v19 }
  0x5f   : > { %1273 = vmatpush3.bf16.msra.mxu0 %v1464_v20  ;;  %1295 = vmatpush3.bf16.msra.mxu1 %v1465_v21 }
  0x60   : > { %1274 = vmatprep.subr.bf16.mxu0 %v1466_v22  ;;  %1296 = vmatprep.subr.bf16.mxu1 %v1467_v23 }
  0x63   : > { %1275 = vmatpush3.bf16.msra.mxu0 %v1468_v24  ;;  %1297 = vmatpush3.bf16.msra.mxu1 %v1469_v25 }
  0x64   : > { %1276 = vmatprep.subr.bf16.mxu0 %v1470_v26  ;;  %1298 = vmatprep.subr.bf16.mxu1 %v1471_v27 }
  0x67   : > { %1277 = vmatpush3.bf16.msra.mxu0 %v1472_v28  ;;  %1299 = vmatpush3.bf16.msra.mxu1 %v1473_v29 }
  0x68   : > { %1278 = vmatprep.subr.bf16.mxu0 %v1474_v30  ;;  %1300 = vmatprep.subr.bf16.mxu1 %v1475_v31  ;;  %v1085_v30 = vld [vmem:[%s1975_s4] sm:$0x1] }
  0x6b   : > { %1279 = vmatpush3.bf16.msra.mxu0 %v1476_v32  ;;  %1301 = vmatpush3.bf16.msra.mxu1 %v1477_v33 }
 0x121   : > { %v675_v45 = vpop.f32.mrb[0].mxu0  ;;  %v718_v46 = vpop.f32.mrb[0].mxu1 }
 0x122   : > { %v676_v47 = vadd.f32 %v675_v45, %v294_v41  ;;  %v719_v48 = vadd.f32 %v718_v46, %v302_v42  ;;  %v677_v49 = vpop.f32.mrb[1].mxu0  ;;  %v720_v50 = vpop.f32.mrb[1].mxu1 }
 0x123   : > { %v678_v51 = vadd.f32 %v677_v49, %v298_v43  ;;  %v721_v52 = vadd.f32 %v720_v50, %v306_v44  ;;  %v679_v53 = vpop.f32.mrb[2].mxu0  ;;  %v722_v54 = vpop.f32.mrb[2].mxu1 }
 0x124   : > { %v680_v55 = vadd.f32 %v679_v53, %v294_v41  ;;  %v723_v56 = vadd.f32 %v722_v54, %v302_v42  ;;  %v681_v57 = vpop.f32.mrb[3].mxu0  ;;  %v724_v58 = vpop.f32.mrb[3].mxu1  ;;  %v727_v61 = vmax.f32 %v676_v47, 0.0  ;;  %v729_v62 = vmax.f32 %v719_v48, 0.0 }
 0x125   : > { %v682_v59 = vadd.f32 %v681_v57, %v298_v43  ;;  %v725_v60 = vadd.f32 %v724_v58, %v306_v44  ;;  %v728_v1 = vmax.f32 %v678_v51, 0.0  ;;  %v730_v2 = vmax.f32 %v721_v52, 0.0 }
 0x126   : > { %v731_v63 = vmax.f32 %v680_v55, 0.0  ;;  %v733_v0 = vmax.f32 %v723_v56, 0.0 }
 0x127   : > { %v732_v3 = vmax.f32 %v682_v59, 0.0  ;;  %v734_v4 = vmax.f32 %v725_v60, 0.0 }
 0x128   : > { %v735_v5 = vpack.c.bf16 %v731_v63, %v727_v61  ;;  %v737_v6 = vpack.c.bf16 %v733_v0, %v729_v62 }
 0x129   : > { %v736_v7 = vpack.c.bf16 %v732_v3, %v728_v1  ;;  %v738_v8 = vpack.c.bf16 %v734_v4, %v730_v2 }
 0x12b   : > { %1027 = vmatprep.mubr.bf16.mxu0 %v736_v7  ;;  %1068 = vmatprep.mubr.bf16.mxu1 %v738_v8 }
 0x12c   : > { %1028 = vmatmul.mubr.bf16.vlgmr.msra.gmra.mrb[4].mxu0 %v735_v5  ;;  %1069 = vmatmul.mubr.bf16.vlgmr.msra.gmra.mrb[4].mxu1 %v737_v6 }
 0x1ff   : > { %v1280_v9 = vpop.f32.mrb[4].mxu0  ;;  %v1302_v10 = vpop.f32.mrb[4].mxu1 }
 0x200   : > { %v1281_v11 = vpop.f32.mrb[5].mxu0  ;;  %v1303_v12 = vpop.f32.mrb[5].mxu1 }
 0x201   : > { %v1282_v13 = vadd.f32 %v1281_v11, %v1280_v9  ;;  %v1304_v14 = vadd.f32 %v1303_v12, %v1302_v10  ;;  %v1283_v15 = vpop.f32.mrb[6].mxu0  ;;  %v1305_v16 = vpop.f32.mrb[6].mxu1 }
 0x202   : > { %v1284_v17 = vpop.f32.mrb[7].mxu0  ;;  %v1306_v18 = vpop.f32.mrb[7].mxu1 }
 0x203   : > { %v1071_v19 = vadd.f32 %v1304_v14, %v1282_v13  ;;  %v1285_v20 = vadd.f32 %v1284_v17, %v1283_v15  ;;  %v1307_v21 = vadd.f32 %v1306_v18, %v1305_v16 }
 0x205   : > { %v1074_v22 = vadd.f32 %v1307_v21, %v1285_v20 }
 0x207   : > { %v1077_v23 = vadd.f32 %v1074_v22, %v1071_v19 }
 0x209   : > { %v1078_v24 = vrot.slane %v1077_v23, 4 }
 0x20b   : > { %v1079_v25 = vadd.f32 %v1078_v24, %v1077_v23 }
 0x20d   : > { %v1080_v26 = vrot.slane %v1079_v25, 2 }
 0x20f   : > { %v1081_v27 = vadd.f32 %v1080_v26, %v1079_v25 }
 0x211   : > { %v1082_v28 = vrot.slane %v1081_v27, 1 }
 0x213   : > { %v1083_v29 = vadd.f32 %v1082_v28, %v1081_v27 }
 0x215   : > { %v1084_v31 = vmul.f32 0.00390625, %v1083_v29 }
 0x217   : > { %v1086_v32 = vadd.f32 %v1085_v30, %v1084_v31 }
 0x219   : > { %1087 = vst [vmem:[%s216_s25] sm:$0x1] %v1086_v32 }
 0x21a   : > { %1491 = shalt.err (!%p1488_p3)
}
 0x21b   : > { %s1492_s11 = scalar_lea.hbm %s1929_s26, 16  ;;  %s1496_s14 = scalar_lea.hbm %s1976_s5, 32 }
 0x21c   : > { %p1493_p4 = scmp.ne.s32.totalorder %s1929_s26, %s1492_s11  ;;  %p1497_p9 = scmp.lt.u32.totalorder %s1929_s26, %s1976_s5 }
 0x21d   : > { %p1498_p10 = scmp.lt.u32.totalorder %s1496_s14, %s1492_s11  ;;  %p1500_p12 = scmp.lt.u32.totalorder %s1492_s11, %s1929_s26 }
 0x21e   : > { %p1494_p7 = pnand %p1493_p4, %p1611_p5 }
 0x21f   : > { %p1499_p11 = por %p1498_p10, %p1497_p9 }
 0x220   : > { %p1495_p8 = pneg %p1494_p7 }
 0x221   : > { %p1501_p13 = por %p1500_p12, %p1499_p11 }
 0x223   : > { %p1502_p0 = pnand %p1501_p13, %p1495_p8 }
 0x225   : > { %1505 = shalt.err (!%p1502_p0)
}
 0x226   : > { %1308 = dma.vmem_to_hbm [thread:$0]  (%p1611_p5), %s1931_s17, 16, %s1929_s26, %s1089_s7  }
 0x227 PF: > { %p1314_p1 = scmp.ge.s32.totalorder %s1540_s21, 2  ;;  %s1113_s23 = sand.u32 1, %s1528_s18  }
 0x228   : > { %s1114_s25 = scalar_lea.sflag [#allocation3], %s1113_s23 }
 0x229   : > { %p1311_p2 = pnand %p1314_p1, %p1615_p6 }
 0x22b   : > { %1523 = dma.done.wait (!%p1311_p2), %s1114_s25, 16  }
 0x22c   : > { %1525 = vsyncadd (!%p1311_p2), %s1114_s25, 4294967280  ;;  %p15_p3 = scmp.ge.s32.totalorder %s1598_s24, 4   ;;  %s1979_s18 = smov %s1532_s19 }
 0x22d   : > { %s1980_s19 = smov %s1536_s20  ;;  %s1981_s20 = smov %s1609_s27 }
 0x22e   : > { %s1982_s21 = smov %s1598_s24  ;;  %17 = sbr.rel (!%p15_p3) target bundleno = 3 (0x3), region = 75 }
 0x235   :  { %1118 = vsyncpa [#allocation3], 1 }
 0x236   :  { %1120 = vsyncpa [#allocation3 + $0x1], 1 }

</bundles_post_ra>
